<compile_context>
chip_gen: v7x
topology: tpu7x:2x2x1
jax: 0.10.0
libtpu: 0.0.40
codegen_flags: <defaults>
</compile_context>

<pallas_src>
from itertools import permutations

import numpy as np
import jax
import jax.numpy as jnp
from jax.experimental import pallas as pl
from jax.experimental.pallas import tpu as pltpu

LOG_SIG_MIN = -20.0
LOG_SIG_MAX = 2.0

# ----------------------------- model sizes -----------------------------
NB_OBJECTS = 3                       # one_hot_encodings are hardcoded 3-dim
DIM_BODY = 6
DIM_OBJECT = 5
OBJ_IDS = [np.array([0, 1, 2]), np.array([3, 4, 5]), np.array([6, 7, 8])]
GOAL_DIM = 9                         # ag / g feature dim
PHI_HIDDEN = 256
DIM_PHI_OUT = 32
RHO_HIDDEN = 256
DIM_ACTION = 4
BATCH = 8

DIM_PHI_IN = 4 * OBJ_IDS[0].shape[0] + DIM_BODY + 2 * (NB_OBJECTS + DIM_OBJECT)   # 34
NUM_PAIRS = NB_OBJECTS * (NB_OBJECTS - 1)        # permutations(3, 2) -> 6
DIN_PAD = 128                                    # lane-aligned contraction dim (34 + ones col + zeros)
PHI_PAD = 128                                    # lane-dense phi / z width
HEAD_PAD = 128                                   # lane-dense output width (first 2*A cols are real)


# ----------------------------- Pallas kernel -----------------------------
def _actor_kernel(inp_ref,
                  pw1_ref, pw2_ref, pb2_ref,
                  rw1_ref, rb1_ref, rw2_ref, rb2_ref,
                  wh_ref, bh_ref,
                  out_ref):
    P, BT, DPAD = inp_ref.shape
    A = DIM_ACTION

    # phi MLP on all pairs of this batch tile at once.
    # (P, BT, 128) -> (P*BT, 128): layout-preserving collapse (BT % 8 == 0).
    x = inp_ref[...].reshape(P * BT, DPAD)
    # pb1 is folded into pw1 (ones column in x), so no bias add here.
    h = jnp.maximum(jnp.dot(x, pw1_ref[...], preferred_element_type=jnp.float32), 0.0)
    phi = jnp.maximum(
        jnp.dot(h, pw2_ref[...], preferred_element_type=jnp.float32) + pb2_ref[...], 0.0)

    # deep-set sum over the pair axis (static, sublane-aligned slabs of BT rows)
    z = phi[0:BT]
    for p in range(1, P):
        z = z + phi[p * BT:(p + 1) * BT]

    # rho MLP + fused mean/log_std head (padded to 128 lanes)
    h1 = jnp.maximum(
        jnp.dot(z, rw1_ref[...], preferred_element_type=jnp.float32) + rb1_ref[...], 0.0)
    h2 = jnp.maximum(
        jnp.dot(h1, rw2_ref[...], preferred_element_type=jnp.float32) + rb2_ref[...], 0.0)
    head = jnp.dot(h2, wh_ref[...], preferred_element_type=jnp.float32) + bh_ref[...]   # (BT, 128)

    # clip only the log_std columns (A <= col < 2A); padded cols are exactly 0.
    col = jax.lax.broadcasted_iota(jnp.int32, head.shape, 1)
    clipped = jnp.clip(head, LOG_SIG_MIN, LOG_SIG_MAX)
    out_ref[...] = jnp.where(col >= A, clipped, head)


def _resident_spec(w):
    """Whole-array block with a constant index_map -> fetched once, stays in VMEM."""
    return pl.BlockSpec(w.shape, lambda i: (0,) * w.ndim)


def continuous_actor_pallas(inp, params):
    """inp: (NUM_PAIRS, BATCH, DIM_PHI_IN). Returns (mean, log_std)."""
    P, B, Din = inp.shape
    A = DIM_ACTION

    # Batch tile: single grid step up to 128 rows, then 128-row tiles.
    bt = min(128, pl.cdiv(B, 8) * 8)
    b_pad = pl.cdiv(B, bt) * bt
    grid = (b_pad // bt,)

    # Input: real features | ones column (bias lane) | zero padding -> 128 lanes.
    ones = jnp.ones((P, B, 1), inp.dtype)
    zeros = jnp.zeros((P, B, DIN_PAD - Din - 1), inp.dtype)
    inp_aug = jnp.concatenate([inp, ones, zeros], axis=-1)
    if b_pad != B:
        inp_aug = jnp.pad(inp_aug, ((0, 0), (0, b_pad - B), (0, 0)))

    # Weights (all padding is exact-math zero padding).
    pw1 = jnp.concatenate([params["pw1"], params["pb1"]], axis=0)            # bias as row 34
    pw1 = jnp.pad(pw1, ((0, DIN_PAD - (Din + 1)), (0, 0)))                   # (128, 256)
    pw2 = jnp.pad(params["pw2"], ((0, 0), (0, PHI_PAD - DIM_PHI_OUT)))       # (256, 128)
    pb2 = jnp.pad(params["pb2"], ((0, 0), (0, PHI_PAD - DIM_PHI_OUT)))       # (1, 128)
    rw1 = jnp.pad(params["rw1"], ((0, PHI_PAD - DIM_PHI_OUT), (0, 0)))       # (128, 256)
    w_head = jnp.pad(jnp.concatenate([params["wm"], params["ws"]], axis=1),
                     ((0, 0), (0, HEAD_PAD - 2 * A)))                        # (256, 128)
    b_head = jnp.pad(jnp.concatenate([params["bm"], params["bs"]], axis=1),
                     ((0, 0), (0, HEAD_PAD - 2 * A)))                        # (1, 128)

    weights = [pw1, pw2, pb2, rw1, params["rb1"], params["rw2"], params["rb2"],
               w_head, b_head]

    in_specs = [pl.BlockSpec((P, bt, DIN_PAD), lambda i: (0, i, 0))] \
             + [_resident_spec(w) for w in weights]
    out_spec = pl.BlockSpec((bt, HEAD_PAD), lambda i: (i, 0))

    out = pl.pallas_call(
        _actor_kernel,
        out_shape=jax.ShapeDtypeStruct((b_pad, HEAD_PAD), jnp.float32),
        grid=grid,
        in_specs=in_specs,
        out_specs=out_spec,
        compiler_params=pltpu.CompilerParams(dimension_semantics=("parallel",)),
    )(inp_aug, *weights)

    head = out[:B, :2 * A]          # zero-cost slices off the lane padding
    return head[:, :A], head[:, A:]


# ----------------------------- glue (plain JAX) -----------------------------
def build_deepset_input(obs, ag, g):
    """Replicates the torch.cat / torch.stack construction of `inp`."""
    batch = obs.shape[0]
    one_hot = jnp.eye(NB_OBJECTS, dtype=obs.dtype)          # rows = one_hot_encodings
    obs_body = obs[:, :DIM_BODY]
    obs_objects = [
        jnp.concatenate(
            [jnp.tile(one_hot[i][None, :], (batch, 1)),
             obs[:, DIM_BODY + DIM_OBJECT * i: DIM_BODY + DIM_OBJECT * (i + 1)]],
            axis=1)
        for i in range(NB_OBJECTS)
    ]
    parts = []
    for i, j in permutations(np.arange(NB_OBJECTS), 2):
        parts.append(jnp.concatenate(
            [ag[:, OBJ_IDS[i]], ag[:, OBJ_IDS[j]],
             g[:, OBJ_IDS[i]], g[:, OBJ_IDS[j]],
             obs_body, obs_objects[i], obs_objects[j]], axis=1))
    return jnp.stack(parts, axis=0)                          # (NUM_PAIRS, B, DIM_PHI_IN)


def init_params(key):
    """Deterministic PyTorch-Linear-style uniform(-1/sqrt(fan_in), 1/sqrt(fan_in))."""
    def linear(k, fan_in, fan_out):
        kw, kb = jax.random.split(k)
        lim = 1.0 / np.sqrt(fan_in)
        w = jax.random.uniform(kw, (fan_in, fan_out), jnp.float32, -lim, lim)
        b = jax.random.uniform(kb, (1, fan_out), jnp.float32, -lim, lim)
        return w, b

    ks = jax.random.split(key, 6)
    pw1, pb1 = linear(ks[0], DIM_PHI_IN, PHI_HIDDEN)
    pw2, pb2 = linear(ks[1], PHI_HIDDEN, DIM_PHI_OUT)
    rw1, rb1 = linear(ks[2], DIM_PHI_OUT, RHO_HIDDEN)
    rw2, rb2 = linear(ks[3], RHO_HIDDEN, RHO_HIDDEN)
    wm, bm = linear(ks[4], RHO_HIDDEN, DIM_ACTION)
    ws, bs = linear(ks[5], RHO_HIDDEN, DIM_ACTION)
    return dict(pw1=pw1, pb1=pb1, pw2=pw2, pb2=pb2,
                rw1=rw1, rb1=rb1, rw2=rw2, rb2=rb2,
                wm=wm, bm=bm, ws=ws, bs=bs)


def reference_forward(inp, p):
    def phi(x):
        h = jnp.maximum(x @ p["pw1"] + p["pb1"], 0.0)
        return jnp.maximum(h @ p["pw2"] + p["pb2"], 0.0)
    z = jnp.sum(jax.vmap(phi)(inp), axis=0)
    h1 = jnp.maximum(z @ p["rw1"] + p["rb1"], 0.0)
    h2 = jnp.maximum(h1 @ p["rw2"] + p["rb2"], 0.0)
    mean = h2 @ p["wm"] + p["bm"]
    logstd = jnp.clip(h2 @ p["ws"] + p["bs"], LOG_SIG_MIN, LOG_SIG_MAX)
    return mean, logstd


# TODO(synk): the module's sample() (Normal rsample + tanh log-prob correction) is
# distribution sampling outside the forward pass and is not implemented here.

if __name__ == "__main__":
    key = jax.random.PRNGKey(0)
    k_obs, k_ag, k_g, k_params = jax.random.split(key, 4)

    obs_dim = DIM_BODY + NB_OBJECTS * DIM_OBJECT
    obs = jax.random.normal(k_obs, (BATCH, obs_dim), jnp.float32)
    ag = jax.random.normal(k_ag, (BATCH, GOAL_DIM), jnp.float32)
    g = jax.random.normal(k_g, (BATCH, GOAL_DIM), jnp.float32)

    params = init_params(k_params)
    inp = build_deepset_input(obs, ag, g)

    mean, logstd = continuous_actor_pallas(inp, params)
    mean = jax.block_until_ready(mean)
    logstd = jax.block_until_ready(logstd)

    ref_mean, ref_logstd = reference_forward(inp, params)
    np.testing.assert_allclose(np.asarray(mean), np.asarray(ref_mean), rtol=1e-4, atol=1e-4)
    np.testing.assert_allclose(np.asarray(logstd), np.asarray(ref_logstd), rtol=1e-4, atol=1e-4)

    print("KERNEL_OK")
</pallas_src>

<mosaic_0001>
module attributes {stable_mosaic.version = 11 : i64} {
  func.func @_actor_kernel(%arg0: i32, %arg1: memref<6x8x128xf32, #tpu.memory_space<vmem>>, %arg2: memref<128x256xf32, #tpu.memory_space<vmem>>, %arg3: memref<256x128xf32, #tpu.memory_space<vmem>>, %arg4: memref<1x128xf32, #tpu.memory_space<vmem>>, %arg5: memref<128x256xf32, #tpu.memory_space<vmem>>, %arg6: memref<1x256xf32, #tpu.memory_space<vmem>>, %arg7: memref<256x256xf32, #tpu.memory_space<vmem>>, %arg8: memref<1x256xf32, #tpu.memory_space<vmem>>, %arg9: memref<256x128xf32, #tpu.memory_space<vmem>>, %arg10: memref<1x128xf32, #tpu.memory_space<vmem>>, %arg11: memref<8x128xf32, #tpu.memory_space<vmem>>) attributes {dimension_semantics = [#tpu.dimension_semantics<parallel>], iteration_bounds = array<i64: 1>, scalar_prefetch = 0 : i64, scratch_operands = 0 : i64, tpu.core_type = #tpu.core_type<tc>, window_params = [{transform_indices = @transform_0, window_bounds = array<i64: 6, 8, 128>}, {pipeline_mode = #tpu.pipeline_mode<synchronous>, transform_indices = @transform_1, window_bounds = array<i64: 128, 256>}, {pipeline_mode = #tpu.pipeline_mode<synchronous>, transform_indices = @transform_2, window_bounds = array<i64: 256, 128>}, {pipeline_mode = #tpu.pipeline_mode<synchronous>, transform_indices = @transform_3, window_bounds = array<i64: 1, 128>}, {pipeline_mode = #tpu.pipeline_mode<synchronous>, transform_indices = @transform_4, window_bounds = array<i64: 128, 256>}, {pipeline_mode = #tpu.pipeline_mode<synchronous>, transform_indices = @transform_5, window_bounds = array<i64: 1, 256>}, {pipeline_mode = #tpu.pipeline_mode<synchronous>, transform_indices = @transform_6, window_bounds = array<i64: 256, 256>}, {pipeline_mode = #tpu.pipeline_mode<synchronous>, transform_indices = @transform_7, window_bounds = array<i64: 1, 256>}, {pipeline_mode = #tpu.pipeline_mode<synchronous>, transform_indices = @transform_8, window_bounds = array<i64: 256, 128>}, {pipeline_mode = #tpu.pipeline_mode<synchronous>, transform_indices = @transform_9, window_bounds = array<i64: 1, 128>}, {transform_indices = @transform_10, window_bounds = array<i64: 8, 128>}]} {
    %c0 = arith.constant 0 : index
    %c0_0 = arith.constant 0 : index
    %c0_1 = arith.constant 0 : index
    %0 = vector.load %arg1[%c0, %c0_0, %c0_1] : memref<6x8x128xf32, #tpu.memory_space<vmem>>, vector<6x8x128xf32>
    %1 = vector.shape_cast %0 : vector<6x8x128xf32> to vector<48x128xf32>
    %c0_2 = arith.constant 0 : index
    %c0_3 = arith.constant 0 : index
    %2 = vector.load %arg2[%c0_2, %c0_3] : memref<128x256xf32, #tpu.memory_space<vmem>>, vector<128x256xf32>
    %cst = arith.constant dense<0.000000e+00> : vector<48x256xf32>
    %3 = tpu.matmul %1, %2, %cst {dimension_numbers = #tpu.dot_dimension_numbers<[1], [0], [0], [1], [0, 0, 1, 1], [], []>} : vector<48x128xf32>, vector<128x256xf32>, vector<48x256xf32> -> vector<48x256xf32>
    %cst_4 = arith.constant 0.000000e+00 : f32
    %4 = vector.broadcast %cst_4 : f32 to vector<48x256xf32>
    %5 = arith.maximumf %3, %4 : vector<48x256xf32>
    %c0_5 = arith.constant 0 : index
    %c0_6 = arith.constant 0 : index
    %6 = vector.load %arg3[%c0_5, %c0_6] : memref<256x128xf32, #tpu.memory_space<vmem>>, vector<256x128xf32>
    %cst_7 = arith.constant dense<0.000000e+00> : vector<48x128xf32>
    %7 = tpu.matmul %5, %6, %cst_7 {dimension_numbers = #tpu.dot_dimension_numbers<[1], [0], [0], [1], [0, 0, 1, 1], [], []>} : vector<48x256xf32>, vector<256x128xf32>, vector<48x128xf32> -> vector<48x128xf32>
    %c0_8 = arith.constant 0 : index
    %c0_9 = arith.constant 0 : index
    %8 = vector.load %arg4[%c0_8, %c0_9] : memref<1x128xf32, #tpu.memory_space<vmem>>, vector<1x128xf32>
    %9 = vector.broadcast %8 : vector<1x128xf32> to vector<48x128xf32>
    %10 = arith.addf %7, %9 : vector<48x128xf32>
    %cst_10 = arith.constant 0.000000e+00 : f32
    %11 = vector.broadcast %cst_10 : f32 to vector<48x128xf32>
    %12 = arith.maximumf %10, %11 : vector<48x128xf32>
    %13 = vector.extract_strided_slice %12 {offsets = [0, 0], sizes = [8, 128], strides = [1, 1]} : vector<48x128xf32> to vector<8x128xf32>
    %14 = vector.extract_strided_slice %12 {offsets = [8, 0], sizes = [8, 128], strides = [1, 1]} : vector<48x128xf32> to vector<8x128xf32>
    %15 = arith.addf %13, %14 : vector<8x128xf32>
    %16 = vector.extract_strided_slice %12 {offsets = [16, 0], sizes = [8, 128], strides = [1, 1]} : vector<48x128xf32> to vector<8x128xf32>
    %17 = arith.addf %15, %16 : vector<8x128xf32>
    %18 = vector.extract_strided_slice %12 {offsets = [24, 0], sizes = [8, 128], strides = [1, 1]} : vector<48x128xf32> to vector<8x128xf32>
    %19 = arith.addf %17, %18 : vector<8x128xf32>
    %20 = vector.extract_strided_slice %12 {offsets = [32, 0], sizes = [8, 128], strides = [1, 1]} : vector<48x128xf32> to vector<8x128xf32>
    %21 = arith.addf %19, %20 : vector<8x128xf32>
    %22 = vector.extract_strided_slice %12 {offsets = [40, 0], sizes = [8, 128], strides = [1, 1]} : vector<48x128xf32> to vector<8x128xf32>
    %23 = arith.addf %21, %22 : vector<8x128xf32>
    %c0_11 = arith.constant 0 : index
    %c0_12 = arith.constant 0 : index
    %24 = vector.load %arg5[%c0_11, %c0_12] : memref<128x256xf32, #tpu.memory_space<vmem>>, vector<128x256xf32>
    %cst_13 = arith.constant dense<0.000000e+00> : vector<8x256xf32>
    %25 = tpu.matmul %23, %24, %cst_13 {dimension_numbers = #tpu.dot_dimension_numbers<[1], [0], [0], [1], [0, 0, 1, 1], [], []>} : vector<8x128xf32>, vector<128x256xf32>, vector<8x256xf32> -> vector<8x256xf32>
    %c0_14 = arith.constant 0 : index
    %c0_15 = arith.constant 0 : index
    %26 = vector.load %arg6[%c0_14, %c0_15] : memref<1x256xf32, #tpu.memory_space<vmem>>, vector<1x256xf32>
    %27 = vector.broadcast %26 : vector<1x256xf32> to vector<8x256xf32>
    %28 = arith.addf %25, %27 : vector<8x256xf32>
    %cst_16 = arith.constant 0.000000e+00 : f32
    %29 = vector.broadcast %cst_16 : f32 to vector<8x256xf32>
    %30 = arith.maximumf %28, %29 : vector<8x256xf32>
    %c0_17 = arith.constant 0 : index
    %c0_18 = arith.constant 0 : index
    %31 = vector.load %arg7[%c0_17, %c0_18] : memref<256x256xf32, #tpu.memory_space<vmem>>, vector<256x256xf32>
    %cst_19 = arith.constant dense<0.000000e+00> : vector<8x256xf32>
    %32 = tpu.matmul %30, %31, %cst_19 {dimension_numbers = #tpu.dot_dimension_numbers<[1], [0], [0], [1], [0, 0, 1, 1], [], []>} : vector<8x256xf32>, vector<256x256xf32>, vector<8x256xf32> -> vector<8x256xf32>
    %c0_20 = arith.constant 0 : index
    %c0_21 = arith.constant 0 : index
    %33 = vector.load %arg8[%c0_20, %c0_21] : memref<1x256xf32, #tpu.memory_space<vmem>>, vector<1x256xf32>
    %34 = vector.broadcast %33 : vector<1x256xf32> to vector<8x256xf32>
    %35 = arith.addf %32, %34 : vector<8x256xf32>
    %cst_22 = arith.constant 0.000000e+00 : f32
    %36 = vector.broadcast %cst_22 : f32 to vector<8x256xf32>
    %37 = arith.maximumf %35, %36 : vector<8x256xf32>
    %c0_23 = arith.constant 0 : index
    %c0_24 = arith.constant 0 : index
    %38 = vector.load %arg9[%c0_23, %c0_24] : memref<256x128xf32, #tpu.memory_space<vmem>>, vector<256x128xf32>
    %cst_25 = arith.constant dense<0.000000e+00> : vector<8x128xf32>
    %39 = tpu.matmul %37, %38, %cst_25 {dimension_numbers = #tpu.dot_dimension_numbers<[1], [0], [0], [1], [0, 0, 1, 1], [], []>} : vector<8x256xf32>, vector<256x128xf32>, vector<8x128xf32> -> vector<8x128xf32>
    %c0_26 = arith.constant 0 : index
    %c0_27 = arith.constant 0 : index
    %40 = vector.load %arg10[%c0_26, %c0_27] : memref<1x128xf32, #tpu.memory_space<vmem>>, vector<1x128xf32>
    %41 = vector.broadcast %40 : vector<1x128xf32> to vector<8x128xf32>
    %42 = arith.addf %39, %41 : vector<8x128xf32>
    %43 = tpu.iota {dimensions = array<i32: 1>} : vector<8x128xi32>
    %cst_28 = arith.constant -2.000000e+01 : f32
    %cst_29 = arith.constant 2.000000e+00 : f32
    %44 = vector.broadcast %cst_28 : f32 to vector<8x128xf32>
    %45 = arith.maximumf %44, %42 : vector<8x128xf32>
    %46 = vector.broadcast %cst_29 : f32 to vector<8x128xf32>
    %47 = arith.minimumf %46, %45 : vector<8x128xf32>
    %c4_i32 = arith.constant 4 : i32
    %48 = vector.broadcast %c4_i32 : i32 to vector<8x128xi32>
    %49 = arith.cmpi sge, %43, %48 : vector<8x128xi32>
    %50 = arith.select %49, %47, %42 : vector<8x128xi1>, vector<8x128xf32>
    %c0_30 = arith.constant 0 : index
    %c0_31 = arith.constant 0 : index
    %51 = vector.load %arg11[%c0_30, %c0_31] : memref<8x128xf32, #tpu.memory_space<vmem>>, vector<8x128xf32>
    tpu.vector_store %arg11[%c0_30, %c0_31], %50 {strides = array<i32>} : memref<8x128xf32, #tpu.memory_space<vmem>>, vector<8x128xf32>,
    return
  }
  func.func @transform_0(%arg0: i32) -> (i32, i32, i32) {
    %c0_i32 = arith.constant 0 : i32
    %c0_i32_0 = arith.constant 0 : i32
    %c0_i32_1 = arith.constant 0 : i32
    return %c0_i32, %arg0, %c0_i32_0 : i32, i32, i32
  }
  func.func @transform_1(%arg0: i32) -> (i32, i32) {
    %c0_i32 = arith.constant 0 : i32
    %c0_i32_0 = arith.constant 0 : i32
    %c0_i32_1 = arith.constant 0 : i32
    return %c0_i32, %c0_i32_0 : i32, i32
  }
  func.func @transform_2(%arg0: i32) -> (i32, i32) {
    %c0_i32 = arith.constant 0 : i32
    %c0_i32_0 = arith.constant 0 : i32
    %c0_i32_1 = arith.constant 0 : i32
    return %c0_i32, %c0_i32_0 : i32, i32
  }
  func.func @transform_3(%arg0: i32) -> (i32, i32) {
    %c0_i32 = arith.constant 0 : i32
    %c0_i32_0 = arith.constant 0 : i32
    %c0_i32_1 = arith.constant 0 : i32
    return %c0_i32, %c0_i32_0 : i32, i32
  }
  func.func @transform_4(%arg0: i32) -> (i32, i32) {
    %c0_i32 = arith.constant 0 : i32
    %c0_i32_0 = arith.constant 0 : i32
    %c0_i32_1 = arith.constant 0 : i32
    return %c0_i32, %c0_i32_0 : i32, i32
  }
  func.func @transform_5(%arg0: i32) -> (i32, i32) {
    %c0_i32 = arith.constant 0 : i32
    %c0_i32_0 = arith.constant 0 : i32
    %c0_i32_1 = arith.constant 0 : i32
    return %c0_i32, %c0_i32_0 : i32, i32
  }
  func.func @transform_6(%arg0: i32) -> (i32, i32) {
    %c0_i32 = arith.constant 0 : i32
    %c0_i32_0 = arith.constant 0 : i32
    %c0_i32_1 = arith.constant 0 : i32
    return %c0_i32, %c0_i32_0 : i32, i32
  }
  func.func @transform_7(%arg0: i32) -> (i32, i32) {
    %c0_i32 = arith.constant 0 : i32
    %c0_i32_0 = arith.constant 0 : i32
    %c0_i32_1 = arith.constant 0 : i32
    return %c0_i32, %c0_i32_0 : i32, i32
  }
  func.func @transform_8(%arg0: i32) -> (i32, i32) {
    %c0_i32 = arith.constant 0 : i32
    %c0_i32_0 = arith.constant 0 : i32
    %c0_i32_1 = arith.constant 0 : i32
    return %c0_i32, %c0_i32_0 : i32, i32
  }
  func.func @transform_9(%arg0: i32) -> (i32, i32) {
    %c0_i32 = arith.constant 0 : i32
    %c0_i32_0 = arith.constant 0 : i32
    %c0_i32_1 = arith.constant 0 : i32
    return %c0_i32, %c0_i32_0 : i32, i32
  }
  func.func @transform_10(%arg0: i32) -> (i32, i32) {
    %c0_i32 = arith.constant 0 : i32
    %c0_i32_0 = arith.constant 0 : i32
    return %arg0, %c0_i32 : i32, i32
  }
}

</mosaic_0001>

<bundles_post_ra>
// kernel: tpu_custom_call.1
= control target key start
LH: loop header
LB: loop body
LE: loop exit
PB: predicated region body
PF: predicated region fallthrough
CT: control target
= control target key end

     0   :  { %15 = vsyncpa [#allocation3], 0  ;;  %s1457_s0 = inlined_call_operand.hbm [shape: f32[6,8,128], index: 0, kind: input, shape index: {}]   ;;  %s1458_s1 = inlined_call_operand.hbm [shape: f32[128,256], index: 1, kind: input, shape index: {}]   ;;  %s1459_s2 = inlined_call_operand.hbm [shape: f32[256,128], index: 2, kind: input, shape index: {}]   ;;  %s1460_s3 = inlined_call_operand.vmem [shape: f32[1,128], index: 3, kind: input, shape index: {}]   ;;  %s1461_s4 = inlined_call_operand.hbm [shape: f32[128,256], index: 4, kind: input, shape index: {}]   ;;  %s1462_s5 = inlined_call_operand.vmem [shape: f32[1,256], index: 5, kind: input, shape index: {}]   ;;  %s1463_s6 = inlined_call_operand.hbm [shape: f32[256,256], index: 6, kind: input, shape index: {}]   ;;  %s1464_s7 = inlined_call_operand.vmem [shape: f32[1,256], index: 7, kind: input, shape index: {}]   ;;  %s1465_s8 = inlined_call_operand.hbm [shape: f32[256,128], index: 8, kind: input, shape index: {}]   ;;  %s1466_s9 = inlined_call_operand.vmem [shape: f32[1,128], index: 9, kind: input, shape index: {}]   ;;  %s1467_s10 = inlined_call_operand.hbm [shape: f32[8,128], index: 10, kind: output, shape index: {}]  }
   0x1   :  { %16 = vsyncpa [#allocation6], 0 }
   0x2   :  { %17 = vsyncpa [#allocation9], 0 }
   0x3   :  { %18 = vsyncpa [#allocation12], 0 }
   0x4   :  { %19 = vsyncpa [#allocation4], 0  ;;  %s1269_s13 = smov [#allocation5]   ;;  %s1105_s17 = scalar_lea.hbm %s1458_s1, 4096 }
   0x5   :  { %s37_s14 = sshll.u32 %s1269_s13, 4  ;;  %p1106_p0 = scmp.ne.s32.totalorder %s1458_s1, %s1105_s17  ;;  %s38_s14 = int_to_ptr.vmem [resolvable:$true] %s37_s14 }
   0x6   :  { %p1109_p1 = scmp.lt.u32.totalorder %s1105_s17, %s1458_s1 }
   0x8   :  { %p1111_p2 = pnand %p1109_p1, %p1106_p0 }
   0xa   :  { %1114 = shalt.err (!%p1111_p2)
}
   0xb   :  { %s1115_s22 = scalar_lea.vmem %s38_s14, 4096  ;;  %p1120_p4 = scmp.lt.s32.totalorder %s38_s14, %s38_s14 }
   0xc   :  { %p1116_p3 = scmp.ne.s32.totalorder %s38_s14, %s1115_s22  ;;  %p1121_p5 = scmp.lt.s32.totalorder %s1115_s22, %s1115_s22 }
   0xe   :  { %p1122_p6 = por %p1121_p5, %p1120_p4 }
  0x10   :  { %p1123_p7 = pnand %p1122_p6, %p1116_p3 }
  0x12   :  { %1126 = shalt.err (!%p1123_p7)
}
  0x13   :  { %s1270_s23 = smov 256   ;;  %s1271_s24 = smov 16  }
  0x14   :  { %43 = dma.hbm_to_vmem [thread:$0]  %s1458_s1, 4096, %s38_s14, [#allocation6], %s1270_s23, %s1270_s23, %s1271_s24  }
  0x15   :  { %s1272_s27 = smov [#allocation8]   ;;  %s1273_s29 = smov [#allocation2]  }
  0x16   :  { %s63_s28 = sshll.u32 %s1272_s27, 4  ;;  %s25_s30 = sshll.u32 %s1273_s29, 4  ;;  %s64_s28 = int_to_ptr.vmem [resolvable:$true] %s63_s28  ;;  %s26_s30 = int_to_ptr.vmem [resolvable:$true] %s25_s30 }
  0x17   :  { %s1127_s13 = scalar_lea.hbm %s1461_s4, 4096 }
  0x18   :  { %p1128_p8 = scmp.ne.s32.totalorder %s1461_s4, %s1127_s13  ;;  %p1131_p9 = scmp.lt.u32.totalorder %s1127_s13, %s1461_s4 }
  0x1a   :  { %p1133_p10 = pnand %p1131_p9, %p1128_p8 }
  0x1c   :  { %1136 = shalt.err (!%p1133_p10)
}
  0x1d   :  { %s1137_s1 = scalar_lea.vmem %s64_s28, 4096  ;;  %p1142_p12 = scmp.lt.s32.totalorder %s64_s28, %s64_s28 }
  0x1e   :  { %p1138_p11 = scmp.ne.s32.totalorder %s64_s28, %s1137_s1  ;;  %p1143_p13 = scmp.lt.s32.totalorder %s1137_s1, %s1137_s1 }
  0x20   :  { %p1144_p0 = por %p1143_p13, %p1142_p12 }
  0x22   :  { %p1145_p1 = pnand %p1144_p0, %p1138_p11 }
  0x24   :  { %1148 = shalt.err (!%p1145_p1)
}
  0x25   :  { %69 = dma.hbm_to_vmem [thread:$0]  %s1461_s4, 4096, %s64_s28, [#allocation9], %s1270_s23, %s1270_s23, %s1271_s24  }
  0x26   :  { %s1149_s22 = scalar_lea.hbm %s1457_s0, 768 }
  0x27   :  { %p1150_p2 = scmp.ne.s32.totalorder %s1457_s0, %s1149_s22  ;;  %p1153_p3 = scmp.lt.u32.totalorder %s1149_s22, %s1457_s0 }
  0x29   :  { %p1155_p4 = pnand %p1153_p3, %p1150_p2 }
  0x2b   :  { %1158 = shalt.err (!%p1155_p4)
}
  0x2c   :  { %s1159_s11 = scalar_lea.vmem %s26_s30, 768  ;;  %p1164_p6 = scmp.lt.s32.totalorder %s26_s30, %s26_s30 }
  0x2d   :  { %p1160_p5 = scmp.ne.s32.totalorder %s26_s30, %s1159_s11  ;;  %p1165_p7 = scmp.lt.s32.totalorder %s1159_s11, %s1159_s11 }
  0x2f   :  { %p1166_p8 = por %p1165_p7, %p1164_p6 }
  0x31   :  { %p1167_p9 = pnand %p1166_p8, %p1160_p5 }
  0x33   :  { %1170 = shalt.err (!%p1167_p9)
}
  0x34   :  { %s1274_s4 = smov 128   ;;  %s1275_s28 = smov 8  }
  0x35   :  { %31 = dma.hbm_to_vmem [thread:$0]  %s1457_s0, 768, %s26_s30, [#allocation3], %s1274_s4, %s1274_s4, %s1275_s28  }
  0x36   :  { %s1276_s15 = smov [#allocation7]   ;;  %s1277_s17 = smov [#allocation10]  }
  0x37   :  { %s49_s16 = sshll.u32 %s1276_s15, 4  ;;  %s77_s18 = sshll.u32 %s1277_s17, 4  ;;  %s50_s16 = int_to_ptr.vmem [resolvable:$true] %s49_s16  ;;  %s78_s18 = int_to_ptr.vmem [resolvable:$true] %s77_s18 }
  0x38   :  { %s1171_s19 = scalar_lea.hbm %s1459_s2, 4096 }
  0x39   :  { %p1172_p10 = scmp.ne.s32.totalorder %s1459_s2, %s1171_s19  ;;  %p1175_p11 = scmp.lt.u32.totalorder %s1171_s19, %s1459_s2 }
  0x3b   :  { %p1177_p12 = pnand %p1175_p11, %p1172_p10 }
  0x3d   :  { %1180 = shalt.err (!%p1177_p12)
}
  0x3e   :  { %s1181_s0 = scalar_lea.vmem %s50_s16, 4096  ;;  %p1186_p0 = scmp.lt.s32.totalorder %s50_s16, %s50_s16 }
  0x3f   :  { %p1182_p13 = scmp.ne.s32.totalorder %s50_s16, %s1181_s0  ;;  %p1187_p1 = scmp.lt.s32.totalorder %s1181_s0, %s1181_s0 }
  0x41   :  { %p1188_p2 = por %p1187_p1, %p1186_p0 }
  0x43   :  { %p1189_p3 = pnand %p1188_p2, %p1182_p13 }
  0x45   :  { %1192 = shalt.err (!%p1189_p3)
}
  0x46   :  { %55 = dma.hbm_to_vmem [thread:$0]  %s1459_s2, 4096, %s50_s16, [#allocation6], %s1274_s4, %s1274_s4, %s1275_s28  }
  0x47   :  { %s1193_s11 = scalar_lea.hbm %s1463_s6, 8192 }
  0x48   :  { %p1194_p4 = scmp.ne.s32.totalorder %s1463_s6, %s1193_s11  ;;  %p1197_p5 = scmp.lt.u32.totalorder %s1193_s11, %s1463_s6 }
  0x4a   :  { %p1199_p6 = pnand %p1197_p5, %p1194_p4 }
  0x4c   :  { %1202 = shalt.err (!%p1199_p6)
}
  0x4d   :  { %s1203_s1 = scalar_lea.vmem %s78_s18, 8192  ;;  %p1208_p8 = scmp.lt.s32.totalorder %s78_s18, %s78_s18 }
  0x4e   :  { %p1204_p7 = scmp.ne.s32.totalorder %s78_s18, %s1203_s1  ;;  %p1209_p9 = scmp.lt.s32.totalorder %s1203_s1, %s1203_s1 }
  0x50   :  { %p1210_p10 = por %p1209_p9, %p1208_p8 }
  0x52   :  { %p1211_p11 = pnand %p1210_p10, %p1204_p7 }
  0x54   :  { %1214 = shalt.err (!%p1211_p11)
}
  0x55   :  { %83 = dma.hbm_to_vmem [thread:$0]  %s1463_s6, 8192, %s78_s18, [#allocation9], %s1270_s23, %s1270_s23, %s1271_s24  }
  0x56   :  { %s1278_s14 = smov [#allocation11]   ;;  %s1215_s22 = scalar_lea.hbm %s1465_s8, 4096 }
  0x57   :  { %s91_s19 = sshll.u32 %s1278_s14, 4  ;;  %p1216_p12 = scmp.ne.s32.totalorder %s1465_s8, %s1215_s22  ;;  %s92_s19 = int_to_ptr.vmem [resolvable:$true] %s91_s19 }
  0x58   :  { %p1219_p13 = scmp.lt.u32.totalorder %s1215_s22, %s1465_s8 }
  0x5a   :  { %p1221_p0 = pnand %p1219_p13, %p1216_p12 }
  0x5c   :  { %1224 = shalt.err (!%p1221_p0)
}
  0x5d   :  { %s1225_s27 = scalar_lea.vmem %s92_s19, 4096  ;;  %p1230_p2 = scmp.lt.s32.totalorder %s92_s19, %s92_s19 }
  0x5e   :  { %p1226_p1 = scmp.ne.s32.totalorder %s92_s19, %s1225_s27  ;;  %p1231_p3 = scmp.lt.s32.totalorder %s1225_s27, %s1225_s27 }
  0x60   :  { %p1232_p4 = por %p1231_p3, %p1230_p2 }
  0x62   :  { %p1233_p5 = pnand %p1232_p4, %p1226_p1 }
  0x64   :  { %1236 = shalt.err (!%p1233_p5)
}
  0x65   :  { %97 = dma.hbm_to_vmem [thread:$0]  %s1465_s8, 4096, %s92_s19, [#allocation12], %s1274_s4, %s1274_s4, %s1275_s28  }
  0x66   :  { %1259 = dma.done.wait [#allocation3], 768  }
  0x67   :  { %1260 = vsyncadd [#allocation3], 4294966528 }
  0x68   :  { %1261 = dma.done.wait [#allocation6], 8192  }
  0x69   :  { %1262 = vsyncadd [#allocation6], 4294959104 }
  0x6a   :  { %1263 = dma.done.wait [#allocation9], 12288  }
  0x6b   :  { %1264 = vsyncadd [#allocation9], 4294955008 }
  0x6c   :  { %1265 = dma.done.wait [#allocation12], 4096  }
  0x6d   :  { %1266 = vsyncadd [#allocation12], 4294963200  ;;  %v1279_v0 = vmov 0.0   ;;  %v125_v1 = vld [vmem:[#allocation5 + $0x8] sm:$0xff]  ;;  %v127_v2 = vld [vmem:[#allocation5 + $0x18] sm:$0xff] }
  0x6e   :  { %220 = vmatprep.mubr.f32.mxu0 %v1279_v0  ;;  %v124_v3 = vld [vmem:[#allocation5] sm:$0xff]  ;;  %v901_v4 = vpack.c.bf16 %v127_v2, %v125_v1  ;;  %v126_v5 = vld [vmem:[#allocation5 + $0x10] sm:$0xff]  ;;  %v129_v6 = vld [vmem:[#allocation5 + $0x28] sm:$0xff] }
  0x6f   :  { %v131_v7 = vld [vmem:[#allocation5 + $0x38] sm:$0xff]  ;;  %v903_v8 = vpack.c.bf16 %v126_v5, %v124_v3  ;;  %v128_v10 = vld [vmem:[#allocation5 + $0x20] sm:$0xff]  ;;  %v130_v11 = vld [vmem:[#allocation5 + $0x30] sm:$0xff] }
  0x70   :  { %v905_v9 = vpack.c.bf16 %v131_v7, %v129_v6  ;;  %v133_v12 = vld [vmem:[#allocation5 + $0x48] sm:$0xff]  ;;  %902 = vmatprep.subr.bf16.mxu0 %v901_v4  ;;  %v135_v13 = vld [vmem:[#allocation5 + $0x58] sm:$0xff]  ;;  %v907_v14 = vpack.c.bf16 %v130_v11, %v128_v10  ;;  %v132_v16 = vld [vmem:[#allocation5 + $0x40] sm:$0xff] }
  0x71   :  { %904 = vmatpush1.bf16.msra.mxu0 %v903_v8  ;;  %v909_v15 = vpack.c.bf16 %v135_v13, %v133_v12  ;;  %v134_v17 = vld [vmem:[#allocation5 + $0x50] sm:$0xff]  ;;  %v137_v18 = vld [vmem:[#allocation5 + $0x68] sm:$0xff]  ;;  %v139_v19 = vld [vmem:[#allocation5 + $0x78] sm:$0xff] }
  0x72   :  { %906 = vmatprep.subr.bf16.mxu0 %v905_v9  ;;  %v911_v20 = vpack.c.bf16 %v134_v17, %v132_v16  ;;  %v913_v21 = vpack.c.bf16 %v139_v19, %v137_v18  ;;  %v136_v22 = vld [vmem:[#allocation5 + $0x60] sm:$0xff]  ;;  %v138_v23 = vld [vmem:[#allocation5 + $0x70] sm:$0xff]  ;;  %v141_v24 = vld [vmem:[#allocation5 + $0x88] sm:$0xff] }
  0x73   :  { %v143_v25 = vld [vmem:[#allocation5 + $0x98] sm:$0xff]  ;;  %v140_v26 = vld [vmem:[#allocation5 + $0x80] sm:$0xff]  ;;  %v142_v27 = vld [vmem:[#allocation5 + $0x90] sm:$0xff]  ;;  %v915_v28 = vpack.c.bf16 %v138_v23, %v136_v22 }
  0x74   :  { %v145_v29 = vld [vmem:[#allocation5 + $0xa8] sm:$0xff]  ;;  %v147_v30 = vld [vmem:[#allocation5 + $0xb8] sm:$0xff]  ;;  %v285_v31 = vld [vmem:[#allocation7 + $0x80] sm:$0xff]  ;;  %v917_v32 = vpack.c.bf16 %v143_v25, %v141_v24  ;;  %v919_v45 = vpack.c.bf16 %v142_v27, %v140_v26 }
  0x75   :  { %908 = vmatpush1.bf16.msra.mxu0 %v907_v14  ;;  %v286_v33 = vld [vmem:[#allocation7 + $0x88] sm:$0xff]  ;;  %v269_v34 = vld [vmem:[#allocation7] sm:$0xff]  ;;  %v287_v38 = vld [vmem:[#allocation7 + $0x90] sm:$0xff]  ;;  %v921_v46 = vpack.c.bf16 %v147_v30, %v145_v29 }
  0x76   :  { %910 = vmatprep.subr.bf16.mxu0 %v909_v15  ;;  %v270_v35 = vld [vmem:[#allocation7 + $0x8] sm:$0xff]  ;;  %v933_v36 = vpack.c.bf16 %v286_v33, %v285_v31  ;;  %v288_v39 = vld [vmem:[#allocation7 + $0x98] sm:$0xff]  ;;  %v271_v40 = vld [vmem:[#allocation7 + $0x10] sm:$0xff] }
  0x77   :  { %v935_v37 = vpack.c.bf16 %v270_v35, %v269_v34  ;;  %v937_v41 = vpack.c.bf16 %v288_v39, %v287_v38  ;;  %v272_v42 = vld [vmem:[#allocation7 + $0x18] sm:$0xff]  ;;  %v289_v43 = vld [vmem:[#allocation7 + $0xa0] sm:$0xff]  ;;  %v290_v44 = vld [vmem:[#allocation7 + $0xa8] sm:$0xff] }
  0x78   :  { %934 = vmatprep.subr.bf16.mxu1 %v933_v36  ;;  %v144_v47 = vld [vmem:[#allocation5 + $0xa0] sm:$0xff]  ;;  %v146_v48 = vld [vmem:[#allocation5 + $0xb0] sm:$0xff]  ;;  %v149_v49 = vld [vmem:[#allocation5 + $0xc8] sm:$0xff]  ;;  %v939_v50 = vpack.c.bf16 %v272_v42, %v271_v40  ;;  %v941_v52 = vpack.c.bf16 %v290_v44, %v289_v43 }
  0x79   :  { %912 = vmatpush1.bf16.msra.mxu0 %v911_v20  ;;  %936 = vmatpush3.bf16.msra.mxu1 %v935_v37  ;;  %v151_v51 = vld [vmem:[#allocation5 + $0xd8] sm:$0xff]  ;;  %v273_v53 = vld [vmem:[#allocation7 + $0x20] sm:$0xff]  ;;  %v274_v54 = vld [vmem:[#allocation7 + $0x28] sm:$0xff]  ;;  %v923_v57 = vpack.c.bf16 %v146_v48, %v144_v47 }
  0x7a   :  { %914 = vmatprep.subr.bf16.mxu0 %v913_v21  ;;  %938 = vmatprep.subr.bf16.mxu1 %v937_v41  ;;  %v291_v55 = vld [vmem:[#allocation7 + $0xb0] sm:$0xff]  ;;  %v292_v56 = vld [vmem:[#allocation7 + $0xb8] sm:$0xff]  ;;  %v925_v58 = vpack.c.bf16 %v151_v51, %v149_v49  ;;  %v148_v59 = vld [vmem:[#allocation5 + $0xc0] sm:$0xff]  ;;  %v943_v62 = vpack.c.bf16 %v274_v54, %v273_v53 }
  0x7b   :  { %v150_v60 = vld [vmem:[#allocation5 + $0xd0] sm:$0xff]  ;;  %v153_v61 = vld [vmem:[#allocation5 + $0xe8] sm:$0xff]  ;;  %v155_v63 = vld [vmem:[#allocation5 + $0xf8] sm:$0xff]  ;;  %v945_v1 = vpack.c.bf16 %v292_v56, %v291_v55 }
  0x7c   :  { %v275_v2 = vld [vmem:[#allocation7 + $0x30] sm:$0xff]  ;;  %v276_v3 = vld [vmem:[#allocation7 + $0x38] sm:$0xff]  ;;  %v293_v4 = vld [vmem:[#allocation7 + $0xc0] sm:$0xff]  ;;  %v927_v6 = vpack.c.bf16 %v150_v60, %v148_v59  ;;  %v929_v7 = vpack.c.bf16 %v155_v63, %v153_v61 }
  0x7d   :  { %916 = vmatpush1.bf16.msra.mxu0 %v915_v28  ;;  %940 = vmatpush3.bf16.msra.mxu1 %v939_v50  ;;  %v294_v5 = vld [vmem:[#allocation7 + $0xc8] sm:$0xff]  ;;  %v152_v8 = vld [vmem:[#allocation5 + $0xe0] sm:$0xff]  ;;  %v154_v9 = vld [vmem:[#allocation5 + $0xf0] sm:$0xff]  ;;  %v947_v10 = vpack.c.bf16 %v276_v3, %v275_v2 }
  0x7e   :  { %918 = vmatprep.subr.bf16.mxu0 %v917_v32  ;;  %942 = vmatprep.subr.bf16.mxu1 %v941_v52  ;;  %v949_v11 = vpack.c.bf16 %v294_v5, %v293_v4  ;;  %v277_v12 = vld [vmem:[#allocation7 + $0x40] sm:$0xff]  ;;  %v278_v13 = vld [vmem:[#allocation7 + $0x48] sm:$0xff]  ;;  %v295_v14 = vld [vmem:[#allocation7 + $0xd0] sm:$0xff]  ;;  %v931_v16 = vpack.c.bf16 %v154_v9, %v152_v8 }
  0x7f   :  { %v296_v15 = vld [vmem:[#allocation7 + $0xd8] sm:$0xff]  ;;  %v951_v17 = vpack.c.bf16 %v278_v13, %v277_v12  ;;  %v279_v19 = vld [vmem:[#allocation7 + $0x50] sm:$0xff]  ;;  %v297_v21 = vld [vmem:[#allocation7 + $0xe0] sm:$0xff] }
  0x80   :  { %v953_v18 = vpack.c.bf16 %v296_v15, %v295_v14  ;;  %v280_v20 = vld [vmem:[#allocation7 + $0x58] sm:$0xff]  ;;  %v298_v22 = vld [vmem:[#allocation7 + $0xe8] sm:$0xff]  ;;  %v118_v23 = vld [vmem:[#allocation2] sm:$0xff] }
  0x81   :  { %920 = vmatpush1.bf16.msra.mxu0 %v919_v45  ;;  %944 = vmatpush3.bf16.msra.mxu1 %v943_v62  ;;  %v955_v24 = vpack.c.bf16 %v280_v20, %v279_v19  ;;  %v957_v25 = vpack.c.bf16 %v298_v22, %v297_v21  ;;  %v281_v26 = vld [vmem:[#allocation7 + $0x60] sm:$0xff]  ;;  %v282_v27 = vld [vmem:[#allocation7 + $0x68] sm:$0xff]  ;;  %v119_v28 = vld [vmem:[#allocation2 + $0x8] sm:$0xff] }
  0x82   :  { %922 = vmatprep.subr.bf16.mxu0 %v921_v46  ;;  %946 = vmatprep.subr.bf16.mxu1 %v945_v1  ;;  %v959_v29 = vpack.c.bf16 %v282_v27, %v281_v26  ;;  %v120_v30 = vld [vmem:[#allocation2 + $0x10] sm:$0xff]  ;;  %v121_v31 = vld [vmem:[#allocation2 + $0x18] sm:$0xff]  ;;  %v122_v32 = vld [vmem:[#allocation2 + $0x20] sm:$0xff] }
  0x83   :  { %v123_v33 = vld [vmem:[#allocation2 + $0x28] sm:$0xff]  ;;  %v299_v34 = vld [vmem:[#allocation7 + $0xf0] sm:$0xff]  ;;  %v415_v40 = vld [vmem:[#allocation8 + $0x8] sm:$0xff] }
  0x84   :  { %v300_v35 = vld [vmem:[#allocation7 + $0xf8] sm:$0xff]  ;;  %v283_v37 = vld [vmem:[#allocation7 + $0x70] sm:$0xff]  ;;  %v414_v42 = vld [vmem:[#allocation8] sm:$0xff] }
  0x85   :  { %924 = vmatpush1.bf16.msra.mxu0 %v923_v57  ;;  %948 = vmatpush3.bf16.msra.mxu1 %v947_v10  ;;  %v961_v36 = vpack.c.bf16 %v300_v35, %v299_v34  ;;  %v284_v38 = vld [vmem:[#allocation7 + $0x78] sm:$0xff]  ;;  %v416_v44 = vld [vmem:[#allocation8 + $0x10] sm:$0xff]  ;;  %v418_v9 = vld [vmem:[#allocation8 + $0x20] sm:$0xff] }
  0x86   :  { %926 = vmatprep.subr.bf16.mxu0 %v925_v58  ;;  %950 = vmatprep.subr.bf16.mxu1 %v949_v11  ;;  %v963_v39 = vpack.c.bf16 %v284_v38, %v283_v37  ;;  %v417_v41 = vld [vmem:[#allocation8 + $0x18] sm:$0xff]  ;;  %v967_v45 = vpack.c.bf16 %v416_v44, %v414_v42  ;;  %v420_v10 = vld [vmem:[#allocation8 + $0x30] sm:$0xff]  ;;  %v423_v12 = vld [vmem:[#allocation8 + $0x48] sm:$0xff] }
  0x87   :  { %v965_v43 = vpack.c.bf16 %v417_v41, %v415_v40  ;;  %v971_v11 = vpack.c.bf16 %v420_v10, %v418_v9  ;;  %v425_v13 = vld [vmem:[#allocation8 + $0x58] sm:$0xff]  ;;  %v422_v15 = vld [vmem:[#allocation8 + $0x40] sm:$0xff]  ;;  %v428_v22 = vld [vmem:[#allocation8 + $0x70] sm:$0xff] }
  0x88   :  { %v973_v14 = vpack.c.bf16 %v425_v13, %v423_v12  ;;  %v429_v19 = vld [vmem:[#allocation8 + $0x78] sm:$0xff]  ;;  %v426_v21 = vld [vmem:[#allocation8 + $0x60] sm:$0xff]  ;;  %v436_v34 = vld [vmem:[#allocation8 + $0xb0] sm:$0xff] }
  0x89   :  { %928 = vmatpush1.bf16.msra.mxu0 %v927_v6  ;;  %952 = vmatpush3.bf16.msra.mxu1 %v951_v17  ;;  %v419_v6 = vld [vmem:[#allocation8 + $0x28] sm:$0xff]  ;;  %v430_v27 = vld [vmem:[#allocation8 + $0x80] sm:$0xff]  ;;  %v441_v37 = vld [vmem:[#allocation8 + $0xd8] sm:$0xff] }
  0x8a   :  { %930 = vmatprep.subr.bf16.mxu0 %v929_v7  ;;  %954 = vmatprep.subr.bf16.mxu1 %v953_v18  ;;  %v421_v7 = vld [vmem:[#allocation8 + $0x38] sm:$0xff]  ;;  %v427_v18 = vld [vmem:[#allocation8 + $0x68] sm:$0xff]  ;;  %v440_v40 = vld [vmem:[#allocation8 + $0xd0] sm:$0xff] }
  0x8b   :  { %v969_v8 = vpack.c.bf16 %v421_v7, %v419_v6  ;;  %v977_v20 = vpack.c.bf16 %v429_v19, %v427_v18  ;;  %v443_v42 = vld [vmem:[#allocation8 + $0xe8] sm:$0xff]  ;;  %v545_v6 = vld [vmem:[#allocation10 + $0x70] sm:$0xff] }
  0x8c   :  { %v548_v7 = vld [vmem:[#allocation10 + $0x88] sm:$0xff]  ;;  %v549_v12 = vld [vmem:[#allocation10 + $0x90] sm:$0xff] }
  0x8d   :  { %932 = vmatpush1.bf16.msra.mxu0 %v931_v16  ;;  %956 = vmatpush3.bf16.msra.mxu1 %v955_v24  ;;  %v424_v16 = vld [vmem:[#allocation8 + $0x50] sm:$0xff]  ;;  %v431_v24 = vld [vmem:[#allocation8 + $0x88] sm:$0xff] }
  0x8e   :  { %958 = vmatprep.subr.bf16.mxu1 %v957_v25  ;;  %966 = vmatprep.subr.bf16.mxu0 %v965_v43  ;;  %v975_v17 = vpack.c.bf16 %v424_v16, %v422_v15  ;;  %v433_v25 = vld [vmem:[#allocation8 + $0x98] sm:$0xff]  ;;  %v552_v13 = vld [vmem:[#allocation10 + $0xa8] sm:$0xff]  ;;  %v553_v18 = vld [vmem:[#allocation10 + $0xb0] sm:$0xff] }
  0x8f   :  { %v981_v26 = vpack.c.bf16 %v433_v25, %v431_v24  ;;  %v445_v43 = vld [vmem:[#allocation8 + $0xf8] sm:$0xff]  ;;  %v556_v19 = vld [vmem:[#allocation10 + $0xc8] sm:$0xff]  ;;  %v557_v24 = vld [vmem:[#allocation10 + $0xd0] sm:$0xff] }
  0x90   :  { %221 = vmatmul.mubr.f32.vlgmr.msra.gmra.mrb[0].mxu0 %v118_v23  ;;  %v979_v23 = vpack.c.bf16 %v428_v22, %v426_v21  ;;  %v993_v44 = vpack.c.bf16 %v445_v43, %v443_v42  ;;  %v560_v25 = vld [vmem:[#allocation10 + $0xe8] sm:$0xff]  ;;  %v569_v42 = vld [vmem:[#allocation10 + $0x130] sm:$0xff] }
  0x91   :  { %226 = vmatprep.mubr.f32.mxu0 %v1279_v0  ;;  %960 = vmatpush3.bf16.msra.mxu1 %v959_v29  ;;  %v572_v43 = vld [vmem:[#allocation10 + $0x148] sm:$0xff] }
  0x92   :  { %962 = vmatprep.subr.bf16.mxu1 %v961_v36  ;;  %968 = vmatpush1.bf16.msra.mxu0 %v967_v45  ;;  %v439_v36 = vld [vmem:[#allocation8 + $0xc8] sm:$0xff]  ;;  %v442_v45 = vld [vmem:[#allocation8 + $0xe0] sm:$0xff] }
  0x93   :  { %970 = vmatprep.subr.bf16.mxu0 %v969_v8  ;;  %v989_v38 = vpack.c.bf16 %v441_v37, %v439_v36  ;;  %v550_v8 = vld [vmem:[#allocation10 + $0x98] sm:$0xff]  ;;  %v565_v36 = vld [vmem:[#allocation10 + $0x110] sm:$0xff]  ;;  %v568_v37 = vld [vmem:[#allocation10 + $0x128] sm:$0xff] }
  0x94   :  { %227 = vmatmul.mubr.f32.gmra.mrb[2].mxu0 %v119_v28  ;;  %v432_v28 = vld [vmem:[#allocation8 + $0x90] sm:$0xff]  ;;  %v1013_v10 = vpack.c.bf16 %v550_v8, %v548_v7 }
  0x95   :  { %232 = vmatprep.mubr.f32.mxu0 %v1279_v0  ;;  %964 = vmatpush3.bf16.msra.mxu1 %v963_v39  ;;  %v983_v29 = vpack.c.bf16 %v432_v28, %v430_v27  ;;  %v438_v39 = vld [vmem:[#allocation8 + $0xc0] sm:$0xff] }
  0x96   :  { %972 = vmatpush1.bf16.msra.mxu0 %v971_v11  ;;  %v991_v41 = vpack.c.bf16 %v440_v40, %v438_v39  ;;  %v547_v11 = vld [vmem:[#allocation10 + $0x80] sm:$0xff] }
  0x97   :  { %974 = vmatprep.subr.bf16.mxu0 %v973_v14  ;;  %v554_v14 = vld [vmem:[#allocation10 + $0xb8] sm:$0xff]  ;;  %v1015_v15 = vpack.c.bf16 %v549_v12, %v547_v11 }
  0x98   :  { %233 = vmatmul.mubr.f32.gmra.mrb[4].mxu0 %v120_v30  ;;  %v435_v30 = vld [vmem:[#allocation8 + $0xa8] sm:$0xff]  ;;  %v1017_v16 = vpack.c.bf16 %v554_v14, %v552_v13 }
  0x99   :  { %238 = vmatprep.mubr.f32.mxu0 %v1279_v0 }
  0x9a   :  { %976 = vmatpush1.bf16.msra.mxu0 %v975_v17  ;;  %v551_v17 = vld [vmem:[#allocation10 + $0xa0] sm:$0xff] }
  0x9b   :  { %978 = vmatprep.subr.bf16.mxu0 %v977_v20  ;;  %v558_v20 = vld [vmem:[#allocation10 + $0xd8] sm:$0xff]  ;;  %v1019_v21 = vpack.c.bf16 %v553_v18, %v551_v17 }
  0x9c   :  { %239 = vmatmul.mubr.f32.gmra.mrb[6].mxu0 %v121_v31  ;;  %v437_v31 = vld [vmem:[#allocation8 + $0xb8] sm:$0xff]  ;;  %v1021_v22 = vpack.c.bf16 %v558_v20, %v556_v19 }
  0x9d   :  { %244 = vmatprep.mubr.f32.mxu0 %v1279_v0 }
  0x9e   :  { %980 = vmatpush1.bf16.msra.mxu0 %v979_v23  ;;  %v555_v23 = vld [vmem:[#allocation10 + $0xc0] sm:$0xff] }
  0x9f   :  { %982 = vmatprep.subr.bf16.mxu0 %v981_v26  ;;  %v562_v26 = vld [vmem:[#allocation10 + $0xf8] sm:$0xff]  ;;  %v1023_v27 = vpack.c.bf16 %v557_v24, %v555_v23 }
  0xa0   :  { %245 = vmatmul.mubr.f32.gmra.mrb[8].mxu0 %v122_v32  ;;  %v985_v32 = vpack.c.bf16 %v437_v31, %v435_v30  ;;  %v1025_v28 = vpack.c.bf16 %v562_v26, %v560_v25  ;;  %v561_v30 = vld [vmem:[#allocation10 + $0xf0] sm:$0xff]  ;;  %v564_v31 = vld [vmem:[#allocation10 + $0x108] sm:$0xff] }
  0xa1   :  { %250 = vmatprep.mubr.f32.mxu0 %v1279_v0 }
  0xa2   :  { %984 = vmatpush1.bf16.msra.mxu0 %v983_v29  ;;  %v559_v29 = vld [vmem:[#allocation10 + $0xe0] sm:$0xff] }
  0xa3   :  { %986 = vmatprep.subr.bf16.mxu0 %v985_v32  ;;  %v566_v32 = vld [vmem:[#allocation10 + $0x118] sm:$0xff] }
  0xa4   :  { %251 = vmatmul.mubr.f32.gmra.mrb[10].mxu0 %v123_v33  ;;  %v434_v33 = vld [vmem:[#allocation8 + $0xa0] sm:$0xff] }
  0xa5   :  { %522 = vmatprep.mubr.f32.mxu0 %v1279_v0  ;;  %v987_v35 = vpack.c.bf16 %v436_v34, %v434_v33  ;;  %v1027_v33 = vpack.c.bf16 %v561_v30, %v559_v29  ;;  %v1029_v34 = vpack.c.bf16 %v566_v32, %v564_v31 }
  0xa7   :  { %988 = vmatpush1.bf16.msra.mxu0 %v987_v35  ;;  %v563_v35 = vld [vmem:[#allocation10 + $0x100] sm:$0xff] }
  0xa8   :  { %990 = vmatprep.subr.bf16.mxu0 %v989_v38  ;;  %v570_v38 = vld [vmem:[#allocation10 + $0x138] sm:$0xff]  ;;  %v1031_v39 = vpack.c.bf16 %v565_v36, %v563_v35 }
  0xa9   :  { %v1033_v40 = vpack.c.bf16 %v570_v38, %v568_v37 }
  0xab   :  { %992 = vmatpush1.bf16.msra.mxu0 %v991_v41  ;;  %v567_v41 = vld [vmem:[#allocation10 + $0x120] sm:$0xff] }
  0xac   :  { %994 = vmatprep.subr.bf16.mxu0 %v993_v44  ;;  %v574_v44 = vld [vmem:[#allocation10 + $0x158] sm:$0xff] }
 0x163   :  { %v222_v46 = vpop.f32.mrb[0].mxu0 }
 0x164   :  { %v224_v47 = vpop.f32.mrb[1].mxu0  ;;  %v257_v0 = vmax.f32 %v222_v46, 0.0  ;;  %v444_v46 = vld [vmem:[#allocation8 + $0xf0] sm:$0xff] }
 0x165   :  { %v258_v48 = vmax.f32 %v224_v47, 0.0  ;;  %v995_v47 = vpack.c.bf16 %v444_v46, %v442_v45  ;;  %v1035_v45 = vpack.c.bf16 %v569_v42, %v567_v41  ;;  %v1037_v46 = vpack.c.bf16 %v574_v44, %v572_v43  ;;  %v587_v43 = vld [vmem:[#allocation10 + $0x1c0] sm:$0xff]  ;;  %v589_v44 = vld [vmem:[#allocation10 + $0x1d0] sm:$0xff] }
 0x167   :  { %v228_v49 = vpop.f32.mrb[2].mxu0  ;;  %372 = vmatprep.mubr.f32.mxu1 %v258_v48  ;;  %996 = vmatpush1.bf16.msra.mxu0 %v995_v47  ;;  %v532_v48 = vld [vmem:[#allocation10 + $0x8] sm:$0xff]  ;;  %v571_v47 = vld [vmem:[#allocation10 + $0x140] sm:$0xff] }
 0x168   :  { %v230_v50 = vpop.f32.mrb[3].mxu0  ;;  %373 = vmatmul.mubr.f32.vlgmr.msra.gmra.mrb[0].mxu1 %v257_v0  ;;  %v259_v52 = vmax.f32 %v228_v49, 0.0  ;;  %v534_v0 = vld [vmem:[#allocation10 + $0x18] sm:$0xff]  ;;  %v531_v49 = vld [vmem:[#allocation10] sm:$0xff] }
 0x169   :  { %v260_v51 = vmax.f32 %v230_v50, 0.0  ;;  %v997_v50 = vpack.c.bf16 %v534_v0, %v532_v48  ;;  %v573_v48 = vld [vmem:[#allocation10 + $0x150] sm:$0xff]  ;;  %v576_v0 = vld [vmem:[#allocation10 + $0x168] sm:$0xff] }
 0x16b   :  { %v234_v53 = vpop.f32.mrb[4].mxu0  ;;  %377 = vmatprep.mubr.f32.mxu1 %v260_v51  ;;  %v533_v51 = vld [vmem:[#allocation10 + $0x10] sm:$0xff]  ;;  %998 = vmatprep.subr.bf16.mxu1 %v997_v50  ;;  %v1039_v50 = vpack.c.bf16 %v573_v48, %v571_v47  ;;  %v594_v47 = vld [vmem:[#allocation10 + $0x1f8] sm:$0xff] }
 0x16c   :  { %v236_v54 = vpop.f32.mrb[5].mxu0  ;;  %378 = vmatmul.mubr.f32.gmra.mrb[2].mxu1 %v259_v52  ;;  %v261_v56 = vmax.f32 %v234_v53, 0.0  ;;  %v536_v52 = vld [vmem:[#allocation10 + $0x28] sm:$0xff]  ;;  %v538_v53 = vld [vmem:[#allocation10 + $0x38] sm:$0xff] }
 0x16d   :  { %v262_v55 = vmax.f32 %v236_v54, 0.0  ;;  %v999_v54 = vpack.c.bf16 %v533_v51, %v531_v49  ;;  %v578_v49 = vld [vmem:[#allocation10 + $0x178] sm:$0xff] }
 0x16e   :  { %v1041_v51 = vpack.c.bf16 %v578_v49, %v576_v0  ;;  %v591_v0 = vld [vmem:[#allocation10 + $0x1e0] sm:$0xff]  ;;  %v593_v49 = vld [vmem:[#allocation10 + $0x1f0] sm:$0xff] }
 0x16f   :  { %v240_v57 = vpop.f32.mrb[6].mxu0  ;;  %382 = vmatprep.mubr.f32.mxu1 %v262_v55  ;;  %v1001_v55 = vpack.c.bf16 %v538_v53, %v536_v52  ;;  %1000 = vmatpush1.bf16.msra.mxu1 %v999_v54  ;;  %v575_v52 = vld [vmem:[#allocation10 + $0x160] sm:$0xff]  ;;  %v577_v53 = vld [vmem:[#allocation10 + $0x170] sm:$0xff]  ;;  %v580_v54 = vld [vmem:[#allocation10 + $0x188] sm:$0xff] }
 0x170   :  { %v242_v58 = vpop.f32.mrb[7].mxu0  ;;  %383 = vmatmul.mubr.f32.gmra.mrb[4].mxu1 %v261_v56  ;;  %v263_v60 = vmax.f32 %v240_v57, 0.0  ;;  %v535_v56 = vld [vmem:[#allocation10 + $0x20] sm:$0xff]  ;;  %v537_v57 = vld [vmem:[#allocation10 + $0x30] sm:$0xff] }
 0x171   :  { %v264_v59 = vmax.f32 %v242_v58, 0.0  ;;  %v540_v58 = vld [vmem:[#allocation10 + $0x48] sm:$0xff]  ;;  %1002 = vmatprep.subr.bf16.mxu1 %v1001_v55  ;;  %v582_v55 = vld [vmem:[#allocation10 + $0x198] sm:$0xff] }
 0x173   :  { %v246_v61 = vpop.f32.mrb[8].mxu0  ;;  %387 = vmatprep.mubr.f32.mxu1 %v264_v59  ;;  %v542_v59 = vld [vmem:[#allocation10 + $0x58] sm:$0xff] }
 0x174   :  { %v248_v62 = vpop.f32.mrb[9].mxu0  ;;  %388 = vmatmul.mubr.f32.gmra.mrb[6].mxu1 %v263_v60  ;;  %v265_v1 = vmax.f32 %v246_v61, 0.0  ;;  %v1003_v60 = vpack.c.bf16 %v537_v57, %v535_v56  ;;  %v1005_v61 = vpack.c.bf16 %v542_v59, %v540_v58  ;;  %v1043_v56 = vpack.c.bf16 %v577_v53, %v575_v52  ;;  %v579_v58 = vld [vmem:[#allocation10 + $0x180] sm:$0xff]  ;;  %v581_v59 = vld [vmem:[#allocation10 + $0x190] sm:$0xff]  ;;  %v697_v52 = vld [vmem:[#allocation11 + $0x88] sm:$0xff] }
 0x175   :  { %v266_v63 = vmax.f32 %v248_v62, 0.0  ;;  %v539_v62 = vld [vmem:[#allocation10 + $0x40] sm:$0xff]  ;;  %v1045_v57 = vpack.c.bf16 %v582_v55, %v580_v54  ;;  %v681_v55 = vld [vmem:[#allocation11 + $0x8] sm:$0xff] }
 0x176   :  { %1004 = vmatpush1.bf16.msra.mxu1 %v1003_v60  ;;  %v584_v60 = vld [vmem:[#allocation10 + $0x1a8] sm:$0xff]  ;;  %v680_v53 = vld [vmem:[#allocation11] sm:$0xff] }
 0x177   :  { %v252_v2 = vpop.f32.mrb[10].mxu0  ;;  %392 = vmatprep.mubr.f32.mxu1 %v266_v63  ;;  %v541_v63 = vld [vmem:[#allocation10 + $0x50] sm:$0xff]  ;;  %1006 = vmatprep.subr.bf16.mxu1 %v1005_v61  ;;  %v586_v61 = vld [vmem:[#allocation10 + $0x1b8] sm:$0xff] }
 0x178   :  { %v254_v3 = vpop.f32.mrb[11].mxu0  ;;  %393 = vmatmul.mubr.f32.gmra.mrb[8].mxu1 %v265_v1  ;;  %v267_v5 = vmax.f32 %v252_v2, 0.0  ;;  %v544_v1 = vld [vmem:[#allocation10 + $0x68] sm:$0xff]  ;;  %v546_v2 = vld [vmem:[#allocation10 + $0x78] sm:$0xff] }
 0x179   :  { %v268_v4 = vmax.f32 %v254_v3, 0.0  ;;  %v1007_v3 = vpack.c.bf16 %v541_v63, %v539_v62  ;;  %v1047_v62 = vpack.c.bf16 %v581_v59, %v579_v58  ;;  %v1049_v63 = vpack.c.bf16 %v586_v61, %v584_v60  ;;  %v682_v60 = vld [vmem:[#allocation11 + $0x10] sm:$0xff]  ;;  %v683_v61 = vld [vmem:[#allocation11 + $0x18] sm:$0xff] }
 0x17a   :  { %v1063_v58 = vpack.c.bf16 %v681_v55, %v680_v53 }
 0x17b   :  { %397 = vmatprep.mubr.f32.mxu1 %v268_v4  ;;  %v1009_v4 = vpack.c.bf16 %v546_v2, %v544_v1  ;;  %1008 = vmatpush1.bf16.msra.mxu1 %v1007_v3  ;;  %v583_v1 = vld [vmem:[#allocation10 + $0x1a0] sm:$0xff]  ;;  %v585_v2 = vld [vmem:[#allocation10 + $0x1b0] sm:$0xff]  ;;  %v588_v3 = vld [vmem:[#allocation10 + $0x1c8] sm:$0xff] }
 0x17c   :  { %398 = vmatmul.mubr.f32.gmra.mrb[10].mxu1 %v267_v5  ;;  %v543_v5 = vld [vmem:[#allocation10 + $0x60] sm:$0xff] }
 0x17d   :  { %v1011_v9 = vpack.c.bf16 %v545_v6, %v543_v5  ;;  %1010 = vmatprep.subr.bf16.mxu1 %v1009_v4  ;;  %v590_v4 = vld [vmem:[#allocation10 + $0x1d8] sm:$0xff]  ;;  %v1051_v5 = vpack.c.bf16 %v585_v2, %v583_v1  ;;  %v1067_v1 = vpack.c.bf16 %v683_v61, %v682_v60 }
 0x17e   :  { %v1053_v6 = vpack.c.bf16 %v590_v4, %v588_v3  ;;  %v684_v3 = vld [vmem:[#allocation11 + $0x20] sm:$0xff]  ;;  %v685_v4 = vld [vmem:[#allocation11 + $0x28] sm:$0xff] }
 0x17f   :  { %1012 = vmatpush1.bf16.msra.mxu1 %v1011_v9 }
 0x180   :  { %1014 = vmatprep.subr.bf16.mxu1 %v1013_v10  ;;  %v814_v10 = vld [vmem:[%s1460_s3] ss:$0 sm:$0xff] }
 0x183   :  { %1016 = vmatpush1.bf16.msra.mxu1 %v1015_v15 }
 0x184   :  { %1018 = vmatprep.subr.bf16.mxu1 %v1017_v16 }
 0x187   :  { %1020 = vmatpush1.bf16.msra.mxu1 %v1019_v21 }
 0x188   :  { %1022 = vmatprep.subr.bf16.mxu1 %v1021_v22 }
 0x18b   :  { %1024 = vmatpush1.bf16.msra.mxu1 %v1023_v27 }
 0x18c   :  { %1026 = vmatprep.subr.bf16.mxu1 %v1025_v28 }
 0x18f   :  { %1028 = vmatpush1.bf16.msra.mxu1 %v1027_v33 }
 0x190   :  { %1030 = vmatprep.subr.bf16.mxu1 %v1029_v34 }
 0x193   :  { %1032 = vmatpush1.bf16.msra.mxu1 %v1031_v39 }
 0x194   :  { %1034 = vmatprep.subr.bf16.mxu1 %v1033_v40 }
 0x197   :  { %1036 = vmatpush1.bf16.msra.mxu1 %v1035_v45  ;;  %v1055_v45 = vpack.c.bf16 %v589_v44, %v587_v43  ;;  %v710_v43 = vld [vmem:[#allocation11 + $0xf0] sm:$0xff]  ;;  %v711_v44 = vld [vmem:[#allocation11 + $0xf8] sm:$0xff] }
 0x198   :  { %1038 = vmatprep.subr.bf16.mxu1 %v1037_v46  ;;  %v592_v46 = vld [vmem:[#allocation10 + $0x1e8] sm:$0xff] }
 0x199   :  { %v1057_v48 = vpack.c.bf16 %v594_v47, %v592_v46  ;;  %v694_v46 = vld [vmem:[#allocation11 + $0x70] sm:$0xff]  ;;  %v695_v47 = vld [vmem:[#allocation11 + $0x78] sm:$0xff] }
 0x19b   :  { %1040 = vmatpush1.bf16.msra.mxu1 %v1039_v50  ;;  %v1059_v50 = vpack.c.bf16 %v593_v49, %v591_v0  ;;  %v595_v0 = vld [vmem:[%s1464_s7] sm:$0x3]  ;;  %s1280_s7 = smov [#allocation13]  }
 0x19c   :  { %1042 = vmatprep.subr.bf16.mxu1 %v1041_v51  ;;  %v696_v51 = vld [vmem:[#allocation11 + $0x80] sm:$0xff]  ;;  %s802_s11 = sshll.u32 %s1280_s7, 4  ;;  %s803_s11 = int_to_ptr.vmem [resolvable:$true] %s802_s11 }
 0x19d   :  { %v1061_v54 = vpack.c.bf16 %v697_v52, %v696_v51  ;;  %s1237_s12 = scalar_lea.vmem %s803_s11, 128  ;;  %p1242_p7 = scmp.lt.s32.totalorder %s803_s11, %s803_s11 }
 0x19e   :  { %p1238_p6 = scmp.ne.s32.totalorder %s803_s11, %s1237_s12  ;;  %p1243_p8 = scmp.lt.s32.totalorder %s1237_s12, %s1237_s12 }
 0x19f   :  { %1044 = vmatpush1.bf16.msra.mxu1 %v1043_v56  ;;  %v698_v56 = vld [vmem:[#allocation11 + $0x90] sm:$0xff]  ;;  %1062 = vmatprep.subr.bf16.mxu0 %v1061_v54 }
 0x1a0   :  { %1046 = vmatprep.subr.bf16.mxu1 %v1045_v57  ;;  %v699_v57 = vld [vmem:[#allocation11 + $0x98] sm:$0xff]  ;;  %p1244_p9 = por %p1243_p8, %p1242_p7 }
 0x1a1   :  { %v1065_v59 = vpack.c.bf16 %v699_v57, %v698_v56 }
 0x1a2   :  { %p1245_p10 = pnand %p1244_p9, %p1238_p6 }
 0x1a3   :  { %1048 = vmatpush1.bf16.msra.mxu1 %v1047_v62  ;;  %v700_v62 = vld [vmem:[#allocation11 + $0xa0] sm:$0xff] }
 0x1a4   :  { %1050 = vmatprep.subr.bf16.mxu1 %v1049_v63  ;;  %v701_v63 = vld [vmem:[#allocation11 + $0xa8] sm:$0xff] }
 0x1a5   :  { %v1069_v2 = vpack.c.bf16 %v701_v63, %v700_v62 }
 0x1a7   :  { %1052 = vmatpush1.bf16.msra.mxu1 %v1051_v5  ;;  %v702_v5 = vld [vmem:[#allocation11 + $0xb0] sm:$0xff] }
 0x1a8   :  { %1054 = vmatprep.subr.bf16.mxu1 %v1053_v6  ;;  %v703_v6 = vld [vmem:[#allocation11 + $0xb8] sm:$0xff] }
 0x1ab   :  { %1056 = vmatpush1.bf16.msra.mxu1 %v1055_v45  ;;  %v1089_v45 = vpack.c.bf16 %v711_v44, %v710_v43 }
 0x1ac   :  { %1058 = vmatprep.subr.bf16.mxu1 %v1057_v48  ;;  %v1091_v48 = vpack.c.bf16 %v695_v47, %v694_v46 }
 0x1af   :  { %1060 = vmatpush1.bf16.msra.mxu1 %v1059_v50 }
 0x23b   :  { %v848_v7 = vpop.f32.mrb[0].mxu1 }
 0x23c   :  { %v849_v8 = vpop.f32.mrb[1].mxu1 }
 0x23d   :  { %v850_v9 = vadd.f32 %v849_v8, %v848_v7  ;;  %v1071_v7 = vpack.c.bf16 %v685_v4, %v684_v3  ;;  %v1073_v8 = vpack.c.bf16 %v703_v6, %v702_v5 }
 0x23f   :  { %v851_v11 = vpop.f32.mrb[2].mxu1  ;;  %v375_v13 = vadd.f32 %v850_v9, %v814_v10  ;;  %v686_v9 = vld [vmem:[#allocation11 + $0x30] sm:$0xff] }
 0x240   :  { %v852_v12 = vpop.f32.mrb[3].mxu1 }
 0x241   :  { %v853_v14 = vadd.f32 %v852_v12, %v851_v11  ;;  %v403_v18 = vmax.f32 %v375_v13, 0.0  ;;  %v704_v11 = vld [vmem:[#allocation11 + $0xc0] sm:$0xff]  ;;  %v705_v12 = vld [vmem:[#allocation11 + $0xc8] sm:$0xff] }
 0x243   :  { %v380_v15 = vadd.f32 %v853_v14, %v814_v10  ;;  %v854_v16 = vpop.f32.mrb[4].mxu1  ;;  %v1077_v14 = vpack.c.bf16 %v705_v12, %v704_v11 }
 0x244   :  { %v855_v17 = vpop.f32.mrb[5].mxu1 }
 0x245   :  { %v404_v19 = vmax.f32 %v380_v15, 0.0  ;;  %v856_v20 = vadd.f32 %v855_v17, %v854_v16  ;;  %v688_v15 = vld [vmem:[#allocation11 + $0x40] sm:$0xff]  ;;  %v689_v16 = vld [vmem:[#allocation11 + $0x48] sm:$0xff]  ;;  %v706_v17 = vld [vmem:[#allocation11 + $0xd0] sm:$0xff] }
 0x247   :  { %v409_v21 = vadd.f32 %v404_v19, %v403_v18  ;;  %v385_v22 = vadd.f32 %v856_v20, %v814_v10  ;;  %v857_v23 = vpop.f32.mrb[6].mxu1  ;;  %v707_v18 = vld [vmem:[#allocation11 + $0xd8] sm:$0xff]  ;;  %v1079_v19 = vpack.c.bf16 %v689_v16, %v688_v15 }
 0x248   :  { %v858_v24 = vpop.f32.mrb[7].mxu1  ;;  %v1081_v20 = vpack.c.bf16 %v707_v18, %v706_v17 }
 0x249   :  { %v405_v25 = vmax.f32 %v385_v22, 0.0  ;;  %v859_v26 = vadd.f32 %v858_v24, %v857_v23  ;;  %v691_v22 = vld [vmem:[#allocation11 + $0x58] sm:$0xff]  ;;  %v708_v23 = vld [vmem:[#allocation11 + $0xe0] sm:$0xff]  ;;  %v709_v24 = vld [vmem:[#allocation11 + $0xe8] sm:$0xff] }
 0x24b   :  { %v410_v27 = vadd.f32 %v409_v21, %v405_v25  ;;  %v390_v28 = vadd.f32 %v859_v26, %v814_v10  ;;  %v860_v29 = vpop.f32.mrb[8].mxu1  ;;  %v690_v21 = vld [vmem:[#allocation11 + $0x50] sm:$0xff]  ;;  %v1085_v26 = vpack.c.bf16 %v709_v24, %v708_v23 }
 0x24c   :  { %v861_v30 = vpop.f32.mrb[9].mxu1  ;;  %v1083_v25 = vpack.c.bf16 %v691_v22, %v690_v21 }
 0x24d   :  { %v406_v31 = vmax.f32 %v390_v28, 0.0  ;;  %v862_v32 = vadd.f32 %v861_v30, %v860_v29  ;;  %v446_v30 = vld [vmem:[%s1462_s5] sm:$0x3] }
 0x24f   :  { %v411_v33 = vadd.f32 %v410_v27, %v406_v31  ;;  %v395_v34 = vadd.f32 %v862_v32, %v814_v10  ;;  %v863_v35 = vpop.f32.mrb[10].mxu1  ;;  %v448_v27 = vlaneseq }
 0x250   :  { %v864_v36 = vpop.f32.mrb[11].mxu1 }
 0x251   :  { %v407_v37 = vmax.f32 %v395_v34, 0.0  ;;  %v865_v38 = vadd.f32 %v864_v36, %v863_v35  ;;  %v449_v28 = vshrl.u32 %v448_v27, 7  ;;  %v790_v61 = vand.u32 127, %v448_v27 }
 0x253   :  { %v412_v39 = vadd.f32 %v411_v33, %v407_v37  ;;  %v400_v40 = vadd.f32 %v865_v38, %v814_v10  ;;  %v687_v10 = vld [vmem:[#allocation11 + $0x38] sm:$0xff]  ;;  %v450_v29 = vsub.s32 0, %v449_v28  ;;  %v454_v31 = vsub.s32 1, %v449_v28 }
 0x254   :  { %v1075_v13 = vpack.c.bf16 %v687_v10, %v686_v9  ;;  %vm793_vm0 = vcmp.ge.s32.totalorder %v790_v61, 4 }
 0x255   :  { %v408_v41 = vmax.f32 %v400_v40, 0.0  ;;  %v451_v32 = vrot.slane %v446_v30, %v450_v29  ;;  %v455_v33 = vrot.slane %v446_v30, %v454_v31  ;;  %v692_v40 = vld [vmem:[#allocation11 + $0x60] sm:$0xff]  ;;  %v600_v49 = vrot.slane %v595_v0, %v450_v29 }
 0x256   :  { %v604_v50 = vrot.slane %v595_v0, %v454_v31 }
 0x257   :  { %v413_v42 = vadd.f32 %v412_v39, %v408_v41  ;;  %v693_v41 = vld [vmem:[#allocation11 + $0x68] sm:$0xff] }
 0x259   :  { %523 = vmatmul.mubr.f32.vlgmr.msra.gmra.mrb[12].mxu0 %v413_v42  ;;  %v1087_v42 = vpack.c.bf16 %v693_v41, %v692_v40 }
 0x25a   :  { %1064 = vmatpush3.bf16.msra.mxu0 %v1063_v58  ;;  %v815_v58 = vld [vmem:[%s1466_s9] ss:$0 sm:$0xff] }
 0x25b   :  { %1066 = vmatprep.subr.bf16.mxu0 %v1065_v59 }
 0x25e   :  { %1068 = vmatpush3.bf16.msra.mxu0 %v1067_v1 }
 0x25f   :  { %1070 = vmatprep.subr.bf16.mxu0 %v1069_v2 }
 0x262   :  { %1072 = vmatpush3.bf16.msra.mxu0 %v1071_v7 }
 0x263   :  { %1074 = vmatprep.subr.bf16.mxu0 %v1073_v8 }
 0x266   :  { %1076 = vmatpush3.bf16.msra.mxu0 %v1075_v13 }
 0x267   :  { %1078 = vmatprep.subr.bf16.mxu0 %v1077_v14 }
 0x26a   :  { %1080 = vmatpush3.bf16.msra.mxu0 %v1079_v19 }
 0x26b   :  { %1082 = vmatprep.subr.bf16.mxu0 %v1081_v20 }
 0x26e   :  { %1084 = vmatpush3.bf16.msra.mxu0 %v1083_v25 }
 0x26f   :  { %1086 = vmatprep.subr.bf16.mxu0 %v1085_v26 }
 0x272   :  { %1088 = vmatpush3.bf16.msra.mxu0 %v1087_v42 }
 0x273   :  { %1090 = vmatprep.subr.bf16.mxu0 %v1089_v45 }
 0x276   :  { %1092 = vmatpush3.bf16.msra.mxu0 %v1091_v48 }
 0x32c   :  { %v524_v34 = vpop.f32.mrb[12].mxu0 }
 0x32d   :  { %v525_v35 = vadd.f32 %v524_v34, %v451_v32  ;;  %v526_v36 = vpop.f32.mrb[13].mxu0 }
 0x32e   :  { %v527_v37 = vadd.f32 %v526_v36, %v455_v33 }
 0x32f   :  { %v529_v39 = vmax.f32 %v525_v35, 0.0 }
 0x330   :  { %v530_v38 = vmax.f32 %v527_v37, 0.0 }
 0x332   :  { %671 = vmatprep.mubr.f32.mxu1 %v530_v38 }
 0x333   :  { %672 = vmatmul.mubr.f32.vlgmr.msra.gmra.mrb[12].mxu1 %v529_v39 }
 0x406   :  { %v673_v51 = vpop.f32.mrb[12].mxu1 }
 0x407   :  { %v674_v52 = vadd.f32 %v673_v51, %v600_v49  ;;  %v675_v53 = vpop.f32.mrb[13].mxu1 }
 0x408   :  { %v676_v54 = vadd.f32 %v675_v53, %v604_v50 }
 0x409   :  { %v678_v56 = vmax.f32 %v674_v52, 0.0 }
 0x40a   :  { %v679_v55 = vmax.f32 %v676_v54, 0.0 }
 0x40c   :  { %783 = vmatprep.mubr.f32.mxu0 %v679_v55 }
 0x40d   :  { %784 = vmatmul.mubr.f32.vlgmr.msra.gmra.mrb[14].mxu0 %v678_v56 }
 0x4e0   :  { %v898_v57 = vpop.f32.mrb[14].mxu0 }
 0x4e1   :  { %v899_v59 = vpop.f32.mrb[15].mxu0 }
 0x4e2   :  { %v900_v60 = vadd.f32 %v899_v59, %v898_v57 }
 0x4e4   :  { %v786_v62 = vadd.f32 %v900_v60, %v815_v58 }
 0x4e6   :  { %v791_v63 = vmax.f32 %v786_v62, -20.0 }
 0x4e8   :  { %v792_v1 = vmin.f32 %v791_v63, 2.0 }
 0x4ea   :  { %v794_v2 = vsel %vm793_vm0, %v792_v1, %v786_v62 }
 0x4eb   :  { %795 = vst [vmem:[#allocation13] sm:$0xff] %v794_v2 }
 0x4ec   :  { %1248 = shalt.err (!%p1245_p10)
}
 0x4ed   :  { %s1249_s15 = scalar_lea.hbm %s1467_s10, 128 }
 0x4ee   :  { %p1250_p11 = scmp.ne.s32.totalorder %s1467_s10, %s1249_s15  ;;  %p1253_p12 = scmp.lt.u32.totalorder %s1249_s15, %s1467_s10 }
 0x4f0   :  { %p1255_p13 = pnand %p1253_p12, %p1250_p11 }
 0x4f2   :  { %1258 = shalt.err (!%p1255_p13)
}
 0x4f3   :  { %805 = dma.vmem_to_hbm [thread:$0]  %s803_s11, 128, %s1467_s10, [#allocation4]  }
 0x4f4   :  { %1267 = dma.done.wait [#allocation4], 128  }
 0x4f5   :  { %1268 = vsyncadd [#allocation4], 4294967168 }
 0x4f6   :  { %809 = vsyncpa [#allocation3], 1 }
 0x4f7   :  { %810 = vsyncpa [#allocation6], 1 }
 0x4f8   :  { %811 = vsyncpa [#allocation9], 1 }
 0x4f9   :  { %812 = vsyncpa [#allocation12], 1 }
 0x4fa   :  { %813 = vsyncpa [#allocation4], 1 }

</bundles_post_ra>
